<compile_context>
chip_gen: v7x
topology: tpu7x:2x2x1
jax: 0.10.0
libtpu: 0.0.40
codegen_flags: <defaults>
</compile_context>

<pallas_src>
import math

import jax
import jax.numpy as jnp
import numpy as np
from jax.experimental import pallas as pl
from jax.experimental.pallas import tpu as pltpu


_LANE = 128
_SUBLANE = 8
_LARGE_BATCH = 1024   # below this, one grid step is fastest on every generation
_MAX_TM = 1024        # row-tile cap for large batches (~85% of HBM roofline)


def _round_up(x, m):
    return ((x + m - 1) // m) * m


# ------------------------------------------------------------------ Pallas kernel

def _mlp_kernel(x_ref, w1_ref, b1_ref, w2_ref, b2_ref, o_ref):
    # fc1: cast x -> bf16 in-kernel (rides free VPU slots), f32 MXU accumulation.
    x = x_ref[...].astype(w1_ref.dtype)
    h = jnp.dot(x, w1_ref[...], preferred_element_type=jnp.float32)
    # bias + ReLU epilogue in f32 (VPU).
    h = jnp.maximum(h + b1_ref[...], 0.0)
    # fc2: hidden never leaves VMEM; f32 accumulation again.
    y = jnp.dot(h.astype(w2_ref.dtype), w2_ref[...],
                preferred_element_type=jnp.float32)
    o_ref[...] = (y + b2_ref[...]).astype(o_ref.dtype)


# ------------------------------------------------------------------ one-time weight prep

def prepare_linear_model_params(params):
    """Hoisted out of the per-call path: transpose / lane-pad / cast once.

    PyTorch layout in, MXU-friendly layout out:
      w1 (H, F) -> W1^T (F, HP)  bf16   (contraction axis F left unpadded)
      w2 (O, H) -> W2^T (HP, NP) bf16
      b1, b2    -> f32 rows padded to the lane-dense widths.
    """
    H, F = params["w1"].shape
    O = params["w2"].shape[0]
    HP = _round_up(H, _LANE)
    NP = _round_up(O, _LANE)

    w1t = jnp.pad(jnp.transpose(params["w1"]),
                  ((0, 0), (0, HP - H))).astype(jnp.bfloat16)            # (F, HP)
    b1 = jnp.pad(params["b1"], (0, HP - H)).reshape(1, HP).astype(jnp.float32)
    w2t = jnp.pad(jnp.transpose(params["w2"]),
                  ((0, HP - H), (0, NP - O))).astype(jnp.bfloat16)       # (HP, NP)
    b2 = jnp.pad(params["b2"], (0, NP - O)).reshape(1, NP).astype(jnp.float32)
    return dict(w1t=w1t, b1=b1, w2t=w2t, b2=b2, n_output=O)


# ------------------------------------------------------------------ forward wrapper

def linear_model_forward(x, prepared):
    """y = fc2(relu(fc1(x))), fused in one Pallas kernel."""
    B, F = x.shape
    HP = prepared["w1t"].shape[1]
    NP = prepared["w2t"].shape[1]
    O = prepared["n_output"]

    # --- batch tiling -----------------------------------------------------
    if B < _LARGE_BATCH:
        # Single grid step: per-step overhead dominates at small batch.
        TM = _round_up(max(B, 1), _SUBLANE)
        n_blk = 1
    else:
        # Even block count so v7x's two TensorCores split the batch evenly;
        # row tile capped at _MAX_TM (x tile + f32 acc/out stay well under VMEM).
        n_blk = max(2, pl.cdiv(B, _MAX_TM))
        if n_blk % 2:
            n_blk += 1
        TM = _round_up(pl.cdiv(B, n_blk), _SUBLANE)
    MP = n_blk * TM

    # Pad rows only; K axis stays full-width f32 (no wrapper-side cast/pad of x).
    x_p = x if MP == B else jnp.pad(x, ((0, MP - B), (0, 0)))

    # Large batches: padded f32 output would be the dominant HBM stream -> bf16.
    out_dtype = jnp.float32 if B < _LARGE_BATCH else jnp.bfloat16

    out_p = pl.pallas_call(
        _mlp_kernel,
        out_shape=jax.ShapeDtypeStruct((MP, NP), out_dtype),
        grid=(n_blk,),
        in_specs=[
            pl.BlockSpec((TM, F), lambda i: (i, 0)),    # x tile (K = full array dim)
            pl.BlockSpec((F, HP), lambda i: (0, 0)),    # W1^T (resident)
            pl.BlockSpec((1, HP), lambda i: (0, 0)),    # b1
            pl.BlockSpec((HP, NP), lambda i: (0, 0)),   # W2^T (resident)
            pl.BlockSpec((1, NP), lambda i: (0, 0)),    # b2
        ],
        out_specs=pl.BlockSpec((TM, NP), lambda i: (i, 0)),
        compiler_params=pltpu.CompilerParams(
            dimension_semantics=("parallel",)),
    )(x_p, prepared["w1t"], prepared["b1"], prepared["w2t"], prepared["b2"])

    return out_p[:B, :O].astype(jnp.float32)


# ------------------------------------------------------------------ pure-JAX reference

def ref_forward(x, params):
    h = jax.nn.relu(x @ params["w1"].T + params["b1"])
    return h @ params["w2"].T + params["b2"]


# ------------------------------------------------------------------ main

if __name__ == "__main__":
    key = jax.random.PRNGKey(0)
    k1, k2, k3, k4, k5 = jax.random.split(key, 5)

    n_feature, h_dim, n_output = 20, 128, 2
    batch = 16

    x = jax.random.normal(k1, (batch, n_feature), jnp.float32)
    params = dict(
        w1=jax.random.normal(k2, (h_dim, n_feature), jnp.float32) / math.sqrt(n_feature),
        b1=jax.random.normal(k3, (h_dim,), jnp.float32) * 0.1,
        w2=jax.random.normal(k4, (n_output, h_dim), jnp.float32) / math.sqrt(h_dim),
        b2=jax.random.normal(k5, (n_output,), jnp.float32) * 0.1,
    )

    prepared = prepare_linear_model_params(params)   # one-time weight prep
    fwd = jax.jit(lambda xx: linear_model_forward(xx, prepared))

    out = jax.block_until_ready(fwd(x))
    ref = ref_forward(x, params)
    assert out.shape == (batch, n_output)
    # bf16 matmul operands with f32 accumulation -> loose tolerance vs f32 reference
    np.testing.assert_allclose(np.asarray(out), np.asarray(ref), rtol=2e-2, atol=2e-2)

    # ragged batch (exercises M-padding + slice path, still a single grid step)
    xr = jax.random.normal(k1, (10, n_feature), jnp.float32)
    out_r = jax.block_until_ready(
        jax.jit(lambda xx: linear_model_forward(xx, prepared))(xr))
    np.testing.assert_allclose(np.asarray(out_r),
                               np.asarray(ref_forward(xr, params)),
                               rtol=2e-2, atol=2e-2)

    print("KERNEL_OK")
</pallas_src>

<mosaic_0001>
module attributes {stable_mosaic.version = 11 : i64} {
  func.func @_mlp_kernel(%arg0: i32, %arg1: memref<16x20xf32, #tpu.memory_space<vmem>>, %arg2: memref<20x128xbf16, #tpu.memory_space<vmem>>, %arg3: memref<1x128xf32, #tpu.memory_space<vmem>>, %arg4: memref<128x128xbf16, #tpu.memory_space<vmem>>, %arg5: memref<1x128xf32, #tpu.memory_space<vmem>>, %arg6: memref<16x128xf32, #tpu.memory_space<vmem>>) attributes {dimension_semantics = [#tpu.dimension_semantics<parallel>], iteration_bounds = array<i64: 1>, scalar_prefetch = 0 : i64, scratch_operands = 0 : i64, tpu.core_type = #tpu.core_type<tc>, window_params = [{transform_indices = @transform_0, window_bounds = array<i64: 16, 20>}, {pipeline_mode = #tpu.pipeline_mode<synchronous>, transform_indices = @transform_1, window_bounds = array<i64: 20, 128>}, {pipeline_mode = #tpu.pipeline_mode<synchronous>, transform_indices = @transform_2, window_bounds = array<i64: 1, 128>}, {pipeline_mode = #tpu.pipeline_mode<synchronous>, transform_indices = @transform_3, window_bounds = array<i64: 128, 128>}, {pipeline_mode = #tpu.pipeline_mode<synchronous>, transform_indices = @transform_4, window_bounds = array<i64: 1, 128>}, {transform_indices = @transform_5, window_bounds = array<i64: 16, 128>}]} {
    %c0 = arith.constant 0 : index
    %c0_0 = arith.constant 0 : index
    %0 = vector.load %arg1[%c0, %c0_0] : memref<16x20xf32, #tpu.memory_space<vmem>>, vector<16x20xf32>
    %1 = arith.truncf %0 : vector<16x20xf32> to vector<16x20xbf16>
    %c0_1 = arith.constant 0 : index
    %c0_2 = arith.constant 0 : index
    %2 = vector.load %arg2[%c0_1, %c0_2] : memref<20x128xbf16, #tpu.memory_space<vmem>>, vector<20x128xbf16>
    %cst = arith.constant dense<0.000000e+00> : vector<16x128xf32>
    %3 = tpu.matmul %1, %2, %cst {dimension_numbers = #tpu.dot_dimension_numbers<[1], [0], [0], [1], [0, 0, 1, 1], [], []>} : vector<16x20xbf16>, vector<20x128xbf16>, vector<16x128xf32> -> vector<16x128xf32>
    %c0_3 = arith.constant 0 : index
    %c0_4 = arith.constant 0 : index
    %4 = vector.load %arg3[%c0_3, %c0_4] : memref<1x128xf32, #tpu.memory_space<vmem>>, vector<1x128xf32>
    %5 = vector.broadcast %4 : vector<1x128xf32> to vector<16x128xf32>
    %6 = arith.addf %3, %5 : vector<16x128xf32>
    %cst_5 = arith.constant 0.000000e+00 : f32
    %7 = vector.broadcast %cst_5 : f32 to vector<16x128xf32>
    %8 = arith.maximumf %6, %7 : vector<16x128xf32>
    %9 = arith.truncf %8 : vector<16x128xf32> to vector<16x128xbf16>
    %c0_6 = arith.constant 0 : index
    %c0_7 = arith.constant 0 : index
    %10 = vector.load %arg4[%c0_6, %c0_7] : memref<128x128xbf16, #tpu.memory_space<vmem>>, vector<128x128xbf16>
    %cst_8 = arith.constant dense<0.000000e+00> : vector<16x128xf32>
    %11 = tpu.matmul %9, %10, %cst_8 {dimension_numbers = #tpu.dot_dimension_numbers<[1], [0], [0], [1], [0, 0, 1, 1], [], []>} : vector<16x128xbf16>, vector<128x128xbf16>, vector<16x128xf32> -> vector<16x128xf32>
    %c0_9 = arith.constant 0 : index
    %c0_10 = arith.constant 0 : index
    %12 = vector.load %arg5[%c0_9, %c0_10] : memref<1x128xf32, #tpu.memory_space<vmem>>, vector<1x128xf32>
    %13 = vector.broadcast %12 : vector<1x128xf32> to vector<16x128xf32>
    %14 = arith.addf %11, %13 : vector<16x128xf32>
    %c0_11 = arith.constant 0 : index
    %c0_12 = arith.constant 0 : index
    %15 = vector.load %arg6[%c0_11, %c0_12] : memref<16x128xf32, #tpu.memory_space<vmem>>, vector<16x128xf32>
    tpu.vector_store %arg6[%c0_11, %c0_12], %14 {strides = array<i32>} : memref<16x128xf32, #tpu.memory_space<vmem>>, vector<16x128xf32>,
    return
  }
  func.func @transform_0(%arg0: i32) -> (i32, i32) {
    %c0_i32 = arith.constant 0 : i32
    %c0_i32_0 = arith.constant 0 : i32
    return %arg0, %c0_i32 : i32, i32
  }
  func.func @transform_1(%arg0: i32) -> (i32, i32) {
    %c0_i32 = arith.constant 0 : i32
    %c0_i32_0 = arith.constant 0 : i32
    %c0_i32_1 = arith.constant 0 : i32
    return %c0_i32, %c0_i32_0 : i32, i32
  }
  func.func @transform_2(%arg0: i32) -> (i32, i32) {
    %c0_i32 = arith.constant 0 : i32
    %c0_i32_0 = arith.constant 0 : i32
    %c0_i32_1 = arith.constant 0 : i32
    return %c0_i32, %c0_i32_0 : i32, i32
  }
  func.func @transform_3(%arg0: i32) -> (i32, i32) {
    %c0_i32 = arith.constant 0 : i32
    %c0_i32_0 = arith.constant 0 : i32
    %c0_i32_1 = arith.constant 0 : i32
    return %c0_i32, %c0_i32_0 : i32, i32
  }
  func.func @transform_4(%arg0: i32) -> (i32, i32) {
    %c0_i32 = arith.constant 0 : i32
    %c0_i32_0 = arith.constant 0 : i32
    %c0_i32_1 = arith.constant 0 : i32
    return %c0_i32, %c0_i32_0 : i32, i32
  }
  func.func @transform_5(%arg0: i32) -> (i32, i32) {
    %c0_i32 = arith.constant 0 : i32
    %c0_i32_0 = arith.constant 0 : i32
    return %arg0, %c0_i32 : i32, i32
  }
}

</mosaic_0001>

<bundles_post_ra>
// kernel: _lambda_.1
= control target key start
LH: loop header
LB: loop body
LE: loop exit
PB: predicated region body
PF: predicated region fallthrough
CT: control target
= control target key end

     0   :  { %10 = vsyncpa [#allocation3], 0  ;;  %s491_s0 = inlined_call_operand.hbm [shape: f32[16,20], index: 0, kind: input, shape index: {}]   ;;  %s492_s1 = inlined_call_operand.hbm [shape: bf16[20,128], index: 1, kind: input, shape index: {}]   ;;  %s493_s2 = inlined_call_operand.vmem [shape: f32[1,128], index: 2, kind: input, shape index: {}]   ;;  %s494_s3 = inlined_call_operand.hbm [shape: bf16[128,128], index: 3, kind: input, shape index: {}]   ;;  %s495_s4 = inlined_call_operand.vmem [shape: f32[1,128], index: 4, kind: input, shape index: {}]   ;;  %s496_s5 = inlined_call_operand.vmem [shape: f32[16,128], index: 5, kind: output, shape index: {}]  }
   0x1   :  { %11 = vsyncpa [#allocation5], 0  ;;  %s398_s18 = smov [#allocation4]   ;;  %s328_s22 = scalar_lea.hbm %s492_s1, 192 }
   0x2   :  { %s29_s19 = sshll.u32 %s398_s18, 4  ;;  %p329_p0 = scmp.ne.s32.totalorder %s492_s1, %s328_s22  ;;  %s30_s19 = int_to_ptr.vmem [resolvable:$true] %s29_s19 }
   0x3   :  { %p332_p1 = scmp.lt.u32.totalorder %s328_s22, %s492_s1 }
   0x5   :  { %p334_p2 = pnand %p332_p1, %p329_p0 }
   0x7   :  { %337 = shalt.err (!%p334_p2)
}
   0x8   :  { %s338_s27 = scalar_lea.vmem %s30_s19, 192  ;;  %p343_p4 = scmp.lt.s32.totalorder %s30_s19, %s30_s19 }
   0x9   :  { %p339_p3 = scmp.ne.s32.totalorder %s30_s19, %s338_s27  ;;  %p344_p5 = scmp.lt.s32.totalorder %s338_s27, %s338_s27 }
   0xb   :  { %p345_p6 = por %p344_p5, %p343_p4 }
   0xd   :  { %p346_p7 = pnand %p345_p6, %p339_p3 }
   0xf   :  { %349 = shalt.err (!%p346_p7)
}
  0x10   :  { %s399_s28 = smov 64   ;;  %s400_s29 = smov 4  }
  0x11   :  { %35 = dma.hbm_to_vmem [thread:$0]  %s492_s1, 192, %s30_s19, [#allocation5], %s399_s28, %s399_s28, %s400_s29  }
  0x12   :  { %s401_s7 = smov [#allocation2]   ;;  %s350_s11 = scalar_lea.hbm %s491_s0, 256 }
  0x13   :  { %s17_s8 = sshll.u32 %s401_s7, 4  ;;  %p351_p8 = scmp.ne.s32.totalorder %s491_s0, %s350_s11  ;;  %s18_s8 = int_to_ptr.vmem [resolvable:$true] %s17_s8 }
  0x14   :  { %p354_p9 = scmp.lt.u32.totalorder %s350_s11, %s491_s0 }
  0x16   :  { %p356_p10 = pnand %p354_p9, %p351_p8 }
  0x18   :  { %359 = shalt.err (!%p356_p10)
}
  0x19   :  { %s360_s16 = scalar_lea.vmem %s18_s8, 256  ;;  %p365_p12 = scmp.lt.s32.totalorder %s18_s8, %s18_s8 }
  0x1a   :  { %p361_p11 = scmp.ne.s32.totalorder %s18_s8, %s360_s16  ;;  %p366_p13 = scmp.lt.s32.totalorder %s360_s16, %s360_s16 }
  0x1c   :  { %p367_p0 = por %p366_p13, %p365_p12 }
  0x1e   :  { %p368_p1 = pnand %p367_p0, %p361_p11 }
  0x20   :  { %371 = shalt.err (!%p368_p1)
}
  0x21   :  { %s402_s1 = smov 128   ;;  %s403_s17 = smov 8  }
  0x22   :  { %23 = dma.hbm_to_vmem [thread:$0]  %s491_s0, 256, %s18_s8, [#allocation3], %s402_s1, %s402_s1, %s403_s17  }
  0x23   :  { %s404_s20 = smov [#allocation6]   ;;  %s372_s24 = scalar_lea.hbm %s494_s3, 1024 }
  0x24   :  { %s43_s21 = sshll.u32 %s404_s20, 4  ;;  %p373_p2 = scmp.ne.s32.totalorder %s494_s3, %s372_s24  ;;  %s44_s21 = int_to_ptr.vmem [resolvable:$true] %s43_s21 }
  0x25   :  { %p376_p3 = scmp.lt.u32.totalorder %s372_s24, %s494_s3 }
  0x27   :  { %p378_p4 = pnand %p376_p3, %p373_p2 }
  0x29   :  { %381 = shalt.err (!%p378_p4)
}
  0x2a   :  { %s382_s6 = scalar_lea.vmem %s44_s21, 1024  ;;  %p387_p6 = scmp.lt.s32.totalorder %s44_s21, %s44_s21 }
  0x2b   :  { %p383_p5 = scmp.ne.s32.totalorder %s44_s21, %s382_s6  ;;  %p388_p7 = scmp.lt.s32.totalorder %s382_s6, %s382_s6 }
  0x2d   :  { %p389_p8 = por %p388_p7, %p387_p6 }
  0x2f   :  { %p390_p9 = pnand %p389_p8, %p383_p5 }
  0x31   :  { %393 = shalt.err (!%p390_p9)
}
  0x32   :  { %49 = dma.hbm_to_vmem [thread:$0]  %s494_s3, 1024, %s44_s21, [#allocation5], %s399_s28, %s399_s28, %s400_s29  }
  0x33   :  { %394 = dma.done.wait [#allocation3], 256  }
  0x34   :  { %395 = vsyncadd [#allocation3], 4294967040 }
  0x35   :  { %396 = dma.done.wait [#allocation5], 1216  }
  0x36   :  { %397 = vsyncadd [#allocation5], 4294966080  ;;  %v405_v0 = vmov 0.0   ;;  %vm406_vm0 = vmmov 0   ;;  %v318_v1 = vld [vmem:[#allocation4] sm:$0xff]   ;;  %vm88_vm1 = vcmask 1041408  }
  0x37   :  { %281 = vmatprep.subr.bf16.mxu0 %v405_v0  ;;  %285 = vmatprep.mubr.msk.bf16.mxu0 %vm406_vm0, %v405_v0  ;;  %v319_v2 = vld [vmem:[#allocation4 + $0x8] ss:$0 sps:$4 sm:$0x33]   ;;  %v62_v3 = vld [vmem:[#allocation2] sm:$0xff]  ;;  %v63_v4 = vld [vmem:[#allocation2 + $0x8] sm:$0xff]  ;;  %vm84_vm2 = vcmask 162816  }
  0x38   :  { %289 = vmatprep.subr.bf16.mxu1 %v405_v0  ;;  %305 = vmatprep.mubr.msk.bf16.mxu1 %vm406_vm0, %v405_v0  ;;  %v90_v5 = vsel %vm88_vm1, %v319_v2, 0  ;;  %v320_v6 = vld [vmem:[#allocation6] sm:$0xff]   ;;  %v64_v7 = vpack.c.bf16 %v63_v4, %v62_v3  ;;  %v321_v8 = vld [vmem:[#allocation6 + $0x8] sm:$0xff]   ;;  %v322_v9 = vld [vmem:[#allocation6 + $0x10] sm:$0xff]  }
  0x39   :  { %282 = vmatpush3.bf16.msra.mxu0 %v318_v1  ;;  %290 = vmatpush3.bf16.msra.mxu1 %v320_v6  ;;  %v323_v10 = vld [vmem:[#allocation6 + $0x18] sm:$0xff]   ;;  %v324_v11 = vld [vmem:[#allocation6 + $0x20] sm:$0xff]   ;;  %v325_v12 = vld [vmem:[#allocation6 + $0x28] sm:$0xff]  }
  0x3a   :  { %283 = vmatprep.subr.bf16.mxu0 %v405_v0  ;;  %291 = vmatprep.subr.bf16.mxu1 %v405_v0  ;;  %v326_v13 = vld [vmem:[#allocation6 + $0x30] sm:$0xff]   ;;  %v327_v14 = vld [vmem:[#allocation6 + $0x38] sm:$0xff]   ;;  %v256_v15 = vld [vmem:[%s493_s2] ss:$0 sm:$0xff] }
  0x3b   :  { %v260_v25 = vld [vmem:[%s495_s4] ss:$0 sm:$0xff] }
  0x3d   :  { %284 = vmatpush3.bf16.msra.mxu0 %v90_v5  ;;  %292 = vmatpush3.bf16.msra.mxu1 %v321_v8 }
  0x3e   :  { %293 = vmatprep.subr.bf16.mxu1 %v405_v0 }
  0x40   :  { %286 = vmatmul.mubr.msk.bf16.vlgmr.msra.gmra.mrb[0].mxu0 %vm84_vm2, %v64_v7 }
  0x41   :  { %294 = vmatpush3.bf16.msra.mxu1 %v322_v9 }
  0x42   :  { %295 = vmatprep.subr.bf16.mxu1 %v405_v0 }
  0x45   :  { %296 = vmatpush3.bf16.msra.mxu1 %v323_v10 }
  0x46   :  { %297 = vmatprep.subr.bf16.mxu1 %v405_v0 }
  0x49   :  { %298 = vmatpush3.bf16.msra.mxu1 %v324_v11 }
  0x4a   :  { %299 = vmatprep.subr.bf16.mxu1 %v405_v0 }
  0x4d   :  { %300 = vmatpush3.bf16.msra.mxu1 %v325_v12 }
  0x4e   :  { %301 = vmatprep.subr.bf16.mxu1 %v405_v0 }
  0x51   :  { %302 = vmatpush3.bf16.msra.mxu1 %v326_v13 }
  0x52   :  { %303 = vmatprep.subr.bf16.mxu1 %v405_v0 }
  0x55   :  { %304 = vmatpush3.bf16.msra.mxu1 %v327_v14 }
 0x113   :  { %v126_v16 = vpop.f32.mrb[0].mxu0 }
 0x114   :  { %v127_v17 = vadd.f32 %v256_v15, %v126_v16  ;;  %v287_v18 = vpop.f32.mrb[1].mxu0 }
 0x115   :  { %v129_v19 = vpop.f32.mrb[2].mxu0 }
 0x116   :  { %v130_v20 = vadd.f32 %v256_v15, %v129_v19  ;;  %v288_v21 = vpop.f32.mrb[3].mxu0  ;;  %v133_v22 = vmax.f32 %v127_v17, 0.0 }
 0x118   :  { %v134_v23 = vmax.f32 %v130_v20, 0.0 }
 0x11a   :  { %v135_v24 = vpack.c.bf16 %v134_v23, %v133_v22 }
 0x11c   :  { %306 = vmatmul.mubr.bf16.vlgmr.msra.gmra.mrb[0].mxu1 %v135_v24 }
 0x1ef   :  { %v241_v26 = vpop.f32.mrb[0].mxu1 }
 0x1f0   :  { %v242_v27 = vadd.f32 %v260_v25, %v241_v26  ;;  %v307_v28 = vpop.f32.mrb[1].mxu1 }
 0x1f1   :  { %v244_v29 = vpop.f32.mrb[2].mxu1 }
 0x1f2   :  { %248 = vst [vmem:[%s496_s5] sm:$0xff] %v242_v27  ;;  %v245_v30 = vadd.f32 %v260_v25, %v244_v29  ;;  %v308_v31 = vpop.f32.mrb[3].mxu1 }
 0x1f4   :  { %249 = vst [vmem:[%s496_s5 + $0x8] sm:$0xff] %v245_v30 }
 0x1f5   :  { %254 = vsyncpa [#allocation3], 1 }
 0x1f6   :  { %255 = vsyncpa [#allocation5], 1 }

</bundles_post_ra>
